<compile_context>
chip_gen: v7x
topology: tpu7x:2x2x1
jax: 0.10.0
libtpu: 0.0.40
codegen_flags: <defaults>
</compile_context>

<pallas_src>
import math
from typing import Any, NamedTuple, Tuple

import jax
import jax.numpy as jnp
from jax.experimental import pallas as pl
from jax.experimental.pallas import tpu as pltpu


def _round_up(a: int, m: int) -> int:
    return ((a + m - 1) // m) * m


def _bucket_batch(b: int) -> int:
    """Bucket batch sizes: pow2 up to 1024, then multiples of 1024 (even grids)."""
    b = max(b, 16)
    if b <= 1024:
        return 1 << (b - 1).bit_length()
    return _round_up(b, 1024)


# Above this total weight footprint, keep grid-invariant weights single-buffered
# (they never change block index) instead of the default double buffering.
_RESIDENT_WEIGHT_SINGLE_BUFFER_BYTES = 4 * 1024 * 1024


# -----------------------------------------------------------------------------
# Kernel: fused MLP (Linear -> ReLU) * len(hidden_sizes) -> Linear (logits)
# -----------------------------------------------------------------------------
def _make_mlp_kernel(num_layers: int, out_pdims: Tuple[int, ...], compute_dtype):
    """refs = [x_ref, w0, ..., w_{L-1}, bias_stack, out_ref]."""

    def kernel(x_ref, *refs):
        w_refs = refs[:num_layers]
        b_ref = refs[num_layers]
        out_ref = refs[num_layers + 1]

        b_all = b_ref[...]                     # (L, max_out_pad) f32, tiny
        h = x_ref[...]                         # compute dtype feeds the MXU
        for layer in range(num_layers):
            out_p = out_pdims[layer]
            w = w_refs[layer][...]
            acc = jnp.dot(h, w, preferred_element_type=jnp.float32)
            acc = acc + b_all[layer:layer + 1, :out_p]     # (1, out_p) broadcast
            if layer < num_layers - 1:
                acc = jnp.maximum(acc, 0.0)    # ReLU in f32 (v5e has no bf16 VPU)
                h = acc.astype(compute_dtype)  # back to compute dtype for next MXU pass
            else:
                out_ref[...] = acc.astype(out_ref.dtype)

    return kernel


# -----------------------------------------------------------------------------
# One-time parameter preparation (hoisted off the forward hot path)
# -----------------------------------------------------------------------------
class PreparedPolicyParams(NamedTuple):
    weights: Tuple[Any, ...]       # padded, compute-dtype, (in_pad, out_pad) each
    bias_stack: Any                # (num_layers, max_out_pad) f32
    state_dim: int
    action_dim: int
    k0_pad: int                    # padded state_dim (K of first matmul)
    out_pdims: Tuple[int, ...]     # 128-padded output dim per layer
    compute_dtype: Any


def prepare_policy_params(params, *, action_dim: int, use_bf16: bool = True):
    """Pad + cast the Linear-stack params once.  `params` = [(W(in,out), b(out)), ...]."""
    num_layers = len(params)
    state_dim = params[0][0].shape[0]
    if params[-1][0].shape[1] != action_dim:
        raise ValueError(
            f"action_dim={action_dim} does not match last layer width "
            f"{params[-1][0].shape[1]}")

    compute_dtype = jnp.bfloat16 if use_bf16 else jnp.float32
    k_align = 16 if use_bf16 else 8            # sublane pack granularity
    k0_pad = _round_up(state_dim, k_align)

    out_dims = [w.shape[1] for w, _ in params]
    out_pdims = tuple(_round_up(d, 128) for d in out_dims)   # lane-dense outputs
    in_pdims = (k0_pad,) + out_pdims[:-1]

    padded_weights = []
    for i, (w, _) in enumerate(params):
        w_p = jnp.pad(
            w, ((0, in_pdims[i] - w.shape[0]), (0, out_pdims[i] - w.shape[1]))
        ).astype(compute_dtype)
        padded_weights.append(w_p)

    max_out_p = max(out_pdims)
    bias_stack = jnp.stack(
        [jnp.pad(b, (0, max_out_p - b.shape[0])) for _, b in params]
    ).astype(jnp.float32)

    return PreparedPolicyParams(
        weights=tuple(padded_weights),
        bias_stack=bias_stack,
        state_dim=state_dim,
        action_dim=action_dim,
        k0_pad=k0_pad,
        out_pdims=out_pdims,
        compute_dtype=compute_dtype,
    )


# -----------------------------------------------------------------------------
# Forward (hot path)
# -----------------------------------------------------------------------------
def reinforce_policy_forward(x, prepared: PreparedPolicyParams, *,
                             out_dtype=jnp.float32, slice_output: bool = True):
    """Returns logits (B, action_dim) — discrete head of REINFORCEPolicy.

    x: (B, state_dim) or (state_dim,) float32.
    out_dtype=jnp.bfloat16 halves the output writeback (helps v5e's single vst
    slot) if downstream log-prob math tolerates it; default stays f32.
    slice_output=False returns the padded (padded_B, out_pad) array and skips
    the extra HBM pass over the logits (slice lazily where consumed).
    """
    if x.ndim == 1:                            # mirrors `x.unsqueeze(0)`
        x = x[None, :]
    orig_batch, state_dim = x.shape
    if state_dim != prepared.state_dim:
        raise ValueError(f"x has state_dim={state_dim}, expected {prepared.state_dim}")

    num_layers = len(prepared.weights)
    out_pdims = prepared.out_pdims
    out_p_last = out_pdims[-1]
    k0_pad = prepared.k0_pad

    # ---- bucketed batch + 16-aligned tile; even grid when >1 tile (v7x 2 TC) -
    padded_batch = _bucket_batch(orig_batch)
    if padded_batch <= 32:
        batch_tile = padded_batch              # single tile; splitting = overhead
    else:
        batch_tile = min(512, padded_batch // 2)
    grid = (padded_batch // batch_tile,)

    # ---- only per-call array work: pad batch rows / K lanes of x, cast -------
    x_p = jnp.pad(
        x, ((0, padded_batch - orig_batch), (0, k0_pad - state_dim))
    ).astype(prepared.compute_dtype)

    # ---- specs ---------------------------------------------------------------
    weight_bytes = sum(int(w.size) * w.dtype.itemsize for w in prepared.weights)
    bias_bytes = int(prepared.bias_stack.size) * 4
    single_buffer = weight_bytes > _RESIDENT_WEIGHT_SINGLE_BUFFER_BYTES

    def _resident_spec(shape):
        # Grid-invariant block: index never changes, so single-buffer when large.
        if single_buffer:
            return pl.BlockSpec(shape, lambda i: (0, 0), pipeline_mode=pl.Buffered(1))
        return pl.BlockSpec(shape, lambda i: (0, 0))

    in_specs = [pl.BlockSpec((batch_tile, k0_pad), lambda i: (i, 0))]
    for w in prepared.weights:
        in_specs.append(_resident_spec(w.shape))
    in_specs.append(_resident_spec(prepared.bias_stack.shape))
    out_spec = pl.BlockSpec((batch_tile, out_p_last), lambda i: (i, 0))

    # ---- VMEM budget (sized against v7x's 64 MiB physical VMEM) --------------
    comp_isz = jnp.dtype(prepared.compute_dtype).itemsize
    out_isz = jnp.dtype(out_dtype).itemsize
    buf_factor = 1 if single_buffer else 2
    max_width = max(out_pdims + (k0_pad,))
    footprint = (2 * batch_tile * k0_pad * comp_isz          # x (double-buffered)
                 + 2 * batch_tile * out_p_last * out_isz      # out (double-buffered)
                 + buf_factor * (weight_bytes + bias_bytes)   # resident params
                 + 3 * batch_tile * max_width * 4)            # live f32 intermediates
    vmem_limit = int(min(64 * 1024 * 1024, max(32 * 1024 * 1024, 2 * footprint)))

    in_pdims = (k0_pad,) + out_pdims[:-1]
    flops = 2 * padded_batch * sum(in_pdims[i] * out_pdims[i] for i in range(num_layers))
    bytes_accessed = (int(x_p.size) * comp_isz + weight_bytes + bias_bytes
                      + padded_batch * out_p_last * out_isz)

    kernel = _make_mlp_kernel(num_layers, out_pdims, prepared.compute_dtype)

    logits = pl.pallas_call(
        kernel,
        out_shape=jax.ShapeDtypeStruct((padded_batch, out_p_last), out_dtype),
        grid_spec=pltpu.PrefetchScalarGridSpec(
            num_scalar_prefetch=0,
            grid=grid,
            in_specs=in_specs,
            out_specs=out_spec,
        ),
        compiler_params=pltpu.CompilerParams(
            dimension_semantics=("parallel",),
            vmem_limit_bytes=vmem_limit,
        ),
        cost_estimate=pl.CostEstimate(
            flops=flops, transcendentals=0, bytes_accessed=bytes_accessed
        ),
    )(x_p, *prepared.weights, prepared.bias_stack)

    if slice_output:
        return logits[:orig_batch, :prepared.action_dim]
    return logits


# -----------------------------------------------------------------------------
# Deterministic parameter init (mirrors nn.Linear default U(-1/sqrt(fan_in), ..))
# -----------------------------------------------------------------------------
def init_policy_params(key, state_dim, hidden_sizes, action_dim):
    dims = [state_dim] + list(hidden_sizes) + [action_dim]
    params = []
    for i in range(len(dims) - 1):
        fan_in, fan_out = dims[i], dims[i + 1]
        bound = 1.0 / math.sqrt(fan_in)
        key, kw, kb = jax.random.split(key, 3)
        w = jax.random.uniform(kw, (fan_in, fan_out), jnp.float32, -bound, bound)
        b = jax.random.uniform(kb, (fan_out,), jnp.float32, -bound, bound)
        params.append((w, b))
    return params


# Pure-JAX references for correctness checking.
def _reference_forward_f32(x, params):
    if x.ndim == 1:
        x = x[None, :]
    h = x
    for i, (w, b) in enumerate(params):
        h = h @ w + b
        if i < len(params) - 1:
            h = jnp.maximum(h, 0.0)
    return h


def _reference_forward_bf16(x, params):
    """Mirrors the kernel's bf16-operand / f32-accumulate numerics."""
    if x.ndim == 1:
        x = x[None, :]
    h = x.astype(jnp.bfloat16)
    acc = None
    for i, (w, b) in enumerate(params):
        w_bf = w.astype(jnp.bfloat16)
        acc = jnp.dot(h.astype(jnp.float32), w_bf.astype(jnp.float32)) + b
        if i < len(params) - 1:
            acc = jnp.maximum(acc, 0.0)
            h = acc.astype(jnp.bfloat16)
    return acc


if __name__ == "__main__":
    # Small shapes consistent with the module's forward (discrete head).
    state_dim = 16
    action_dim = 8
    hidden_sizes = [64, 64]   # REINFORCE_CONFIG['hidden_units'] stand-in
    batch = 8

    key = jax.random.PRNGKey(0)
    key, kx = jax.random.split(key)
    x = jax.random.normal(kx, (batch, state_dim), jnp.float32)
    params = init_policy_params(key, state_dim, hidden_sizes, action_dim)

    # One-time param prep (bf16 operands, f32 accumulate).
    prepared = prepare_policy_params(params, action_dim=action_dim, use_bf16=True)

    logits = reinforce_policy_forward(x, prepared)
    logits = jax.block_until_ready(logits)
    assert logits.shape == (batch, action_dim), logits.shape

    ref_bf16 = _reference_forward_bf16(x, params)
    ref_f32 = _reference_forward_f32(x, params)
    assert jnp.allclose(logits, ref_bf16, atol=1e-3, rtol=1e-3), "mismatch vs bf16 reference"
    assert jnp.allclose(logits, ref_f32, atol=5e-2, rtol=5e-2), "mismatch vs f32 reference"

    # f32-operand fallback path (exact nn.Linear numerics, tighter tolerance).
    prepared_f32 = prepare_policy_params(params, action_dim=action_dim, use_bf16=False)
    logits_f32 = jax.block_until_ready(reinforce_policy_forward(x, prepared_f32))
    assert jnp.allclose(logits_f32, ref_f32, atol=1e-4, rtol=1e-4), "mismatch vs f32 reference (f32 path)"

    # 1-D state path (mirrors `x.unsqueeze(0)` in the PyTorch forward).
    s = jax.random.normal(jax.random.PRNGKey(1), (state_dim,), jnp.float32)
    l1 = jax.block_until_ready(reinforce_policy_forward(s, prepared))
    assert l1.shape == (1, action_dim), l1.shape
    assert jnp.allclose(l1, _reference_forward_bf16(s, params), atol=1e-3, rtol=1e-3)

    # Different batch size maps into the same bucket -> same compiled variant.
    x5 = jax.random.normal(jax.random.PRNGKey(2), (5, state_dim), jnp.float32)
    l5 = jax.block_until_ready(reinforce_policy_forward(x5, prepared))
    assert l5.shape == (5, action_dim)
    assert jnp.allclose(l5, _reference_forward_bf16(x5, params), atol=1e-3, rtol=1e-3)

    # TODO(synk): continuous branch (mean_layer + log_std.expand_as) reuses the same
    # MLP kernel with a different head; log_std broadcast and Categorical/Normal
    # sampling in get_action are host-side / trivial wrapper ops, not kernels.

    print("KERNEL_OK")
</pallas_src>

<mosaic_0001>
module attributes {stable_mosaic.version = 11 : i64} {
  func.func @kernel(%arg0: i32, %arg1: memref<16x16xbf16, #tpu.memory_space<vmem>>, %arg2: memref<16x128xbf16, #tpu.memory_space<vmem>>, %arg3: memref<128x128xbf16, #tpu.memory_space<vmem>>, %arg4: memref<128x128xbf16, #tpu.memory_space<vmem>>, %arg5: memref<3x128xf32, #tpu.memory_space<vmem>>, %arg6: memref<16x128xf32, #tpu.memory_space<vmem>>) attributes {dimension_semantics = [#tpu.dimension_semantics<parallel>], iteration_bounds = array<i64: 1>, scalar_prefetch = 0 : i64, scratch_operands = 0 : i64, tpu.core_type = #tpu.core_type<tc>, window_params = [{transform_indices = @transform_0, window_bounds = array<i64: 16, 16>}, {pipeline_mode = #tpu.pipeline_mode<synchronous>, transform_indices = @transform_1, window_bounds = array<i64: 16, 128>}, {pipeline_mode = #tpu.pipeline_mode<synchronous>, transform_indices = @transform_2, window_bounds = array<i64: 128, 128>}, {pipeline_mode = #tpu.pipeline_mode<synchronous>, transform_indices = @transform_3, window_bounds = array<i64: 128, 128>}, {pipeline_mode = #tpu.pipeline_mode<synchronous>, transform_indices = @transform_4, window_bounds = array<i64: 3, 128>}, {transform_indices = @transform_5, window_bounds = array<i64: 16, 128>}]} {
    %c0 = arith.constant 0 : index
    %c0_0 = arith.constant 0 : index
    %0 = vector.load %arg5[%c0, %c0_0] : memref<3x128xf32, #tpu.memory_space<vmem>>, vector<3x128xf32>
    %c0_1 = arith.constant 0 : index
    %c0_2 = arith.constant 0 : index
    %1 = vector.load %arg1[%c0_1, %c0_2] : memref<16x16xbf16, #tpu.memory_space<vmem>>, vector<16x16xbf16>
    %c0_3 = arith.constant 0 : index
    %c0_4 = arith.constant 0 : index
    %2 = vector.load %arg2[%c0_3, %c0_4] : memref<16x128xbf16, #tpu.memory_space<vmem>>, vector<16x128xbf16>
    %cst = arith.constant dense<0.000000e+00> : vector<16x128xf32>
    %3 = tpu.matmul %1, %2, %cst {dimension_numbers = #tpu.dot_dimension_numbers<[1], [0], [0], [1], [0, 0, 1, 1], [], []>} : vector<16x16xbf16>, vector<16x128xbf16>, vector<16x128xf32> -> vector<16x128xf32>
    %4 = vector.extract_strided_slice %0 {offsets = [0, 0], sizes = [1, 128], strides = [1, 1]} : vector<3x128xf32> to vector<1x128xf32>
    %5 = vector.broadcast %4 : vector<1x128xf32> to vector<16x128xf32>
    %6 = arith.addf %3, %5 : vector<16x128xf32>
    %cst_5 = arith.constant 0.000000e+00 : f32
    %7 = vector.broadcast %cst_5 : f32 to vector<16x128xf32>
    %8 = arith.maximumf %6, %7 : vector<16x128xf32>
    %9 = arith.truncf %8 : vector<16x128xf32> to vector<16x128xbf16>
    %c0_6 = arith.constant 0 : index
    %c0_7 = arith.constant 0 : index
    %10 = vector.load %arg3[%c0_6, %c0_7] : memref<128x128xbf16, #tpu.memory_space<vmem>>, vector<128x128xbf16>
    %cst_8 = arith.constant dense<0.000000e+00> : vector<16x128xf32>
    %11 = tpu.matmul %9, %10, %cst_8 {dimension_numbers = #tpu.dot_dimension_numbers<[1], [0], [0], [1], [0, 0, 1, 1], [], []>} : vector<16x128xbf16>, vector<128x128xbf16>, vector<16x128xf32> -> vector<16x128xf32>
    %12 = vector.extract_strided_slice %0 {offsets = [1, 0], sizes = [1, 128], strides = [1, 1]} : vector<3x128xf32> to vector<1x128xf32>
    %13 = vector.broadcast %12 : vector<1x128xf32> to vector<16x128xf32>
    %14 = arith.addf %11, %13 : vector<16x128xf32>
    %cst_9 = arith.constant 0.000000e+00 : f32
    %15 = vector.broadcast %cst_9 : f32 to vector<16x128xf32>
    %16 = arith.maximumf %14, %15 : vector<16x128xf32>
    %17 = arith.truncf %16 : vector<16x128xf32> to vector<16x128xbf16>
    %c0_10 = arith.constant 0 : index
    %c0_11 = arith.constant 0 : index
    %18 = vector.load %arg4[%c0_10, %c0_11] : memref<128x128xbf16, #tpu.memory_space<vmem>>, vector<128x128xbf16>
    %cst_12 = arith.constant dense<0.000000e+00> : vector<16x128xf32>
    %19 = tpu.matmul %17, %18, %cst_12 {dimension_numbers = #tpu.dot_dimension_numbers<[1], [0], [0], [1], [0, 0, 1, 1], [], []>} : vector<16x128xbf16>, vector<128x128xbf16>, vector<16x128xf32> -> vector<16x128xf32>
    %20 = vector.extract_strided_slice %0 {offsets = [2, 0], sizes = [1, 128], strides = [1, 1]} : vector<3x128xf32> to vector<1x128xf32>
    %21 = vector.broadcast %20 : vector<1x128xf32> to vector<16x128xf32>
    %22 = arith.addf %19, %21 : vector<16x128xf32>
    %c0_13 = arith.constant 0 : index
    %c0_14 = arith.constant 0 : index
    %23 = vector.load %arg6[%c0_13, %c0_14] : memref<16x128xf32, #tpu.memory_space<vmem>>, vector<16x128xf32>
    tpu.vector_store %arg6[%c0_13, %c0_14], %22 {strides = array<i32>} : memref<16x128xf32, #tpu.memory_space<vmem>>, vector<16x128xf32>,
    return
  }
  func.func @transform_0(%arg0: i32) -> (i32, i32) {
    %c0_i32 = arith.constant 0 : i32
    %c0_i32_0 = arith.constant 0 : i32
    return %arg0, %c0_i32 : i32, i32
  }
  func.func @transform_1(%arg0: i32) -> (i32, i32) {
    %c0_i32 = arith.constant 0 : i32
    %c0_i32_0 = arith.constant 0 : i32
    %c0_i32_1 = arith.constant 0 : i32
    return %c0_i32, %c0_i32_0 : i32, i32
  }
  func.func @transform_2(%arg0: i32) -> (i32, i32) {
    %c0_i32 = arith.constant 0 : i32
    %c0_i32_0 = arith.constant 0 : i32
    %c0_i32_1 = arith.constant 0 : i32
    return %c0_i32, %c0_i32_0 : i32, i32
  }
  func.func @transform_3(%arg0: i32) -> (i32, i32) {
    %c0_i32 = arith.constant 0 : i32
    %c0_i32_0 = arith.constant 0 : i32
    %c0_i32_1 = arith.constant 0 : i32
    return %c0_i32, %c0_i32_0 : i32, i32
  }
  func.func @transform_4(%arg0: i32) -> (i32, i32) {
    %c0_i32 = arith.constant 0 : i32
    %c0_i32_0 = arith.constant 0 : i32
    %c0_i32_1 = arith.constant 0 : i32
    return %c0_i32, %c0_i32_0 : i32, i32
  }
  func.func @transform_5(%arg0: i32) -> (i32, i32) {
    %c0_i32 = arith.constant 0 : i32
    %c0_i32_0 = arith.constant 0 : i32
    return %arg0, %c0_i32 : i32, i32
  }
}

</mosaic_0001>

<bundles_post_ra>
// kernel: tpu_custom_call.1
= control target key start
LH: loop header
LB: loop body
LE: loop exit
PB: predicated region body
PF: predicated region fallthrough
CT: control target
= control target key end

     0   :  { %10 = vsyncpa [#allocation3], 0  ;;  %s769_s0 = inlined_call_operand.hbm [shape: bf16[16,16], index: 0, kind: input, shape index: {}]   ;;  %s770_s1 = inlined_call_operand.hbm [shape: bf16[16,128], index: 1, kind: input, shape index: {}]   ;;  %s771_s2 = inlined_call_operand.hbm [shape: bf16[128,128], index: 2, kind: input, shape index: {}]   ;;  %s772_s3 = inlined_call_operand.hbm [shape: bf16[128,128], index: 3, kind: input, shape index: {}]   ;;  %s773_s4 = inlined_call_operand.vmem [shape: f32[3,128], index: 4, kind: input, shape index: {}]   ;;  %s774_s5 = inlined_call_operand.hbm [shape: f32[16,128], index: 5, kind: output, shape index: {}]  }
   0x1   :  { %11 = vsyncpa [#allocation6], 0 }
   0x2   :  { %12 = vsyncpa [#allocation9], 0 }
   0x3   :  { %13 = vsyncpa [#allocation4], 0  ;;  %s619_s18 = smov [#allocation5]   ;;  %s620_s20 = smov [#allocation2]  }
   0x4   :  { %s31_s19 = sshll.u32 %s619_s18, 4  ;;  %s19_s21 = sshll.u32 %s620_s20, 4  ;;  %s32_s19 = int_to_ptr.vmem [resolvable:$true] %s31_s19  ;;  %s660_s21 = int_to_ptr.vmem [resolvable:$true] %s19_s21 }
   0x5   :  { %s501_s24 = scalar_lea.hbm %s770_s1, 128 }
   0x6   :  { %p502_p0 = scmp.ne.s32.totalorder %s770_s1, %s501_s24  ;;  %p505_p1 = scmp.lt.u32.totalorder %s501_s24, %s770_s1 }
   0x8   :  { %p507_p2 = pnand %p505_p1, %p502_p0 }
   0xa   :  { %510 = shalt.err (!%p507_p2)
}
   0xb   :  { %s511_s29 = scalar_lea.vmem %s32_s19, 128  ;;  %p516_p4 = scmp.lt.s32.totalorder %s32_s19, %s32_s19 }
   0xc   :  { %p512_p3 = scmp.ne.s32.totalorder %s32_s19, %s511_s29  ;;  %p517_p5 = scmp.lt.s32.totalorder %s511_s29, %s511_s29 }
   0xe   :  { %p518_p6 = por %p517_p5, %p516_p4 }
  0x10   :  { %p519_p7 = pnand %p518_p6, %p512_p3 }
  0x12   :  { %522 = shalt.err (!%p519_p7)
}
  0x13   :  { %s621_s30 = smov 64   ;;  %s622_s6 = smov 4  }
  0x14   :  { %37 = dma.hbm_to_vmem [thread:$0]  %s770_s1, 128, %s32_s19, [#allocation6], %s621_s30, %s621_s30, %s622_s6  }
  0x15   :  { %s523_s11 = scalar_lea.hbm %s769_s0, 128 }
  0x16   :  { %p524_p8 = scmp.ne.s32.totalorder %s769_s0, %s523_s11  ;;  %p527_p9 = scmp.lt.u32.totalorder %s523_s11, %s769_s0 }
  0x18   :  { %p529_p10 = pnand %p527_p9, %p524_p8 }
  0x1a   :  { %532 = shalt.err (!%p529_p10)
}
  0x1b   :  { %s533_s16 = scalar_lea.vmem %s660_s21, 128  ;;  %p538_p12 = scmp.lt.s32.totalorder %s660_s21, %s660_s21 }
  0x1c   :  { %p534_p11 = scmp.ne.s32.totalorder %s660_s21, %s533_s16  ;;  %p539_p13 = scmp.lt.s32.totalorder %s533_s16, %s533_s16 }
  0x1e   :  { %p540_p0 = por %p539_p13, %p538_p12 }
  0x20   :  { %p541_p1 = pnand %p540_p0, %p534_p11 }
  0x22   :  { %544 = shalt.err (!%p541_p1)
}
  0x23   :  { %25 = dma.hbm_to_vmem [thread:$0]  %s769_s0, 128, %s660_s21, [#allocation3], %s621_s30, %s621_s30, %s622_s6  }
  0x24   :  { %s623_s18 = smov [#allocation7]   ;;  %s624_s20 = smov [#allocation8]  }
  0x25   :  { %s43_s19 = sshll.u32 %s623_s18, 4  ;;  %s55_s22 = sshll.u32 %s624_s20, 4  ;;  %s44_s19 = int_to_ptr.vmem [resolvable:$true] %s43_s19  ;;  %s697_s22 = int_to_ptr.vmem [resolvable:$true] %s55_s22 }
  0x26   :  { %s545_s25 = scalar_lea.hbm %s771_s2, 1024 }
  0x27   :  { %p546_p2 = scmp.ne.s32.totalorder %s771_s2, %s545_s25  ;;  %p549_p3 = scmp.lt.u32.totalorder %s545_s25, %s771_s2 }
  0x29   :  { %p551_p4 = pnand %p549_p3, %p546_p2 }
  0x2b   :  { %554 = shalt.err (!%p551_p4)
}
  0x2c   :  { %s555_s0 = scalar_lea.vmem %s44_s19, 1024  ;;  %p560_p6 = scmp.lt.s32.totalorder %s44_s19, %s44_s19 }
  0x2d   :  { %p556_p5 = scmp.ne.s32.totalorder %s44_s19, %s555_s0  ;;  %p561_p7 = scmp.lt.s32.totalorder %s555_s0, %s555_s0 }
  0x2f   :  { %p562_p8 = por %p561_p7, %p560_p6 }
  0x31   :  { %p563_p9 = pnand %p562_p8, %p556_p5 }
  0x33   :  { %566 = shalt.err (!%p563_p9)
}
  0x34   :  { %49 = dma.hbm_to_vmem [thread:$0]  %s771_s2, 1024, %s44_s19, [#allocation6], %s621_s30, %s621_s30, %s622_s6  }
  0x35   :  { %s567_s10 = scalar_lea.hbm %s772_s3, 1024 }
  0x36   :  { %p568_p10 = scmp.ne.s32.totalorder %s772_s3, %s567_s10  ;;  %p571_p11 = scmp.lt.u32.totalorder %s567_s10, %s772_s3 }
  0x38   :  { %p573_p12 = pnand %p571_p11, %p568_p10 }
  0x3a   :  { %576 = shalt.err (!%p573_p12)
}
  0x3b   :  { %s577_s15 = scalar_lea.vmem %s697_s22, 1024  ;;  %p582_p0 = scmp.lt.s32.totalorder %s697_s22, %s697_s22 }
  0x3c   :  { %p578_p13 = scmp.ne.s32.totalorder %s697_s22, %s577_s15  ;;  %p583_p1 = scmp.lt.s32.totalorder %s577_s15, %s577_s15 }
  0x3e   :  { %p584_p2 = por %p583_p1, %p582_p0 }
  0x40   :  { %p585_p3 = pnand %p584_p2, %p578_p13 }
  0x42   :  { %588 = shalt.err (!%p585_p3)
}
  0x43   :  { %61 = dma.hbm_to_vmem [thread:$0]  %s772_s3, 1024, %s697_s22, [#allocation9], %s621_s30, %s621_s30, %s622_s6  }
  0x44   :  { %611 = dma.done.wait [#allocation3], 128  }
  0x45   :  { %612 = vsyncadd [#allocation3], 4294967168 }
  0x46   :  { %613 = dma.done.wait [#allocation6], 1152  }
  0x47   :  { %614 = vsyncadd [#allocation6], 4294966144 }
  0x48   :  { %615 = dma.done.wait [#allocation9], 1024  }
  0x49   :  { %616 = vsyncadd [#allocation9], 4294966272  ;;  %v625_v0 = vmov 0.0   ;;  %vm626_vm0 = vmmov 0   ;;  %v483_v1 = vld [vmem:[#allocation5] sm:$0xff]   ;;  %v484_v2 = vld [vmem:[#allocation2] sm:$0xff]   ;;  %v82_v17 = vlaneseq }
  0x4a   :  { %426 = vmatprep.subr.bf16.mxu0 %v625_v0  ;;  %428 = vmatprep.mubr.msk.bf16.mxu0 %vm626_vm0, %v625_v0  ;;  %vm97_vm1 = vcmask 130048   ;;  %v485_v3 = vld [vmem:[#allocation7] sm:$0xff]   ;;  %v486_v4 = vld [vmem:[#allocation7 + $0x8] sm:$0xff]   ;;  %v487_v5 = vld [vmem:[#allocation7 + $0x10] sm:$0xff]  }
  0x4b   :  { %432 = vmatprep.subr.bf16.mxu1 %v625_v0  ;;  %448 = vmatprep.mubr.msk.bf16.mxu1 %vm626_vm0, %v625_v0  ;;  %v488_v6 = vld [vmem:[#allocation7 + $0x18] sm:$0xff]   ;;  %v489_v7 = vld [vmem:[#allocation7 + $0x20] sm:$0xff]   ;;  %v490_v8 = vld [vmem:[#allocation7 + $0x28] sm:$0xff]   ;;  %v83_v18 = vshrl.u32 %v82_v17, 7 }
  0x4c   :  { %427 = vmatpush3.bf16.msra.mxu0 %v483_v1  ;;  %433 = vmatpush3.bf16.msra.mxu1 %v485_v3  ;;  %v491_v9 = vld [vmem:[#allocation7 + $0x30] sm:$0xff]   ;;  %v492_v10 = vld [vmem:[#allocation7 + $0x38] sm:$0xff]   ;;  %v493_v11 = vld [vmem:[#allocation8] sm:$0xff]  }
  0x4d   :  { %452 = vmatprep.subr.bf16.mxu0 %v625_v0  ;;  %434 = vmatprep.subr.bf16.mxu1 %v625_v0  ;;  %v494_v12 = vld [vmem:[#allocation8 + $0x8] sm:$0xff]   ;;  %v495_v13 = vld [vmem:[#allocation8 + $0x10] sm:$0xff]   ;;  %v496_v14 = vld [vmem:[#allocation8 + $0x18] sm:$0xff]   ;;  %v84_v19 = vsub.s32 0, %v83_v18  ;;  %v163_v33 = vsub.s32 1, %v83_v18  ;;  %v275_v44 = vsub.s32 2, %v83_v18 }
  0x4e   :  { %v497_v15 = vld [vmem:[#allocation8 + $0x20] sm:$0xff]   ;;  %v498_v16 = vld [vmem:[#allocation8 + $0x28] sm:$0xff]   ;;  %v77_v20 = vld [vmem:[%s773_s4] sm:$0x7]  ;;  %s627_s4 = smov [#allocation10]  }
  0x4f   :  { %429 = vmatmul.mubr.msk.bf16.vlgmr.msra.gmra.mrb[0].mxu0 %vm97_vm1, %v484_v2  ;;  %v85_v21 = vrot.slane %v77_v20, %v84_v19  ;;  %v499_v31 = vld [vmem:[#allocation8 + $0x30] sm:$0xff]   ;;  %v500_v32 = vld [vmem:[#allocation8 + $0x38] sm:$0xff]   ;;  %v164_v34 = vrot.slane %v77_v20, %v163_v33  ;;  %v276_v45 = vrot.slane %v77_v20, %v275_v44  ;;  %s373_s6 = sshll.u32 %s627_s4, 4  ;;  %s374_s6 = int_to_ptr.vmem [resolvable:$true] %s373_s6 }
  0x50   :  { %468 = vmatprep.mubr.msk.bf16.mxu0 %vm626_vm0, %v625_v0  ;;  %435 = vmatpush3.bf16.msra.mxu1 %v486_v4  ;;  %s589_s1 = scalar_lea.vmem %s374_s6, 256  ;;  %p594_p5 = scmp.lt.s32.totalorder %s374_s6, %s374_s6 }
  0x51   :  { %436 = vmatprep.subr.bf16.mxu1 %v625_v0  ;;  %453 = vmatpush3.bf16.msra.mxu0 %v493_v11  ;;  %p590_p4 = scmp.ne.s32.totalorder %s374_s6, %s589_s1  ;;  %p595_p6 = scmp.lt.s32.totalorder %s589_s1, %s589_s1 }
  0x52   :  { %454 = vmatprep.subr.bf16.mxu0 %v625_v0 }
  0x53   :  { %p596_p7 = por %p595_p6, %p594_p5 }
  0x54   :  { %437 = vmatpush3.bf16.msra.mxu1 %v487_v5 }
  0x55   :  { %438 = vmatprep.subr.bf16.mxu1 %v625_v0  ;;  %455 = vmatpush3.bf16.msra.mxu0 %v494_v12  ;;  %p597_p8 = pnand %p596_p7, %p590_p4 }
  0x56   :  { %456 = vmatprep.subr.bf16.mxu0 %v625_v0 }
  0x58   :  { %439 = vmatpush3.bf16.msra.mxu1 %v488_v6 }
  0x59   :  { %440 = vmatprep.subr.bf16.mxu1 %v625_v0  ;;  %457 = vmatpush3.bf16.msra.mxu0 %v495_v13 }
  0x5a   :  { %458 = vmatprep.subr.bf16.mxu0 %v625_v0 }
  0x5c   :  { %441 = vmatpush3.bf16.msra.mxu1 %v489_v7 }
  0x5d   :  { %442 = vmatprep.subr.bf16.mxu1 %v625_v0  ;;  %459 = vmatpush3.bf16.msra.mxu0 %v496_v14 }
  0x5e   :  { %460 = vmatprep.subr.bf16.mxu0 %v625_v0 }
  0x60   :  { %443 = vmatpush3.bf16.msra.mxu1 %v490_v8 }
  0x61   :  { %444 = vmatprep.subr.bf16.mxu1 %v625_v0  ;;  %461 = vmatpush3.bf16.msra.mxu0 %v497_v15 }
  0x62   :  { %462 = vmatprep.subr.bf16.mxu0 %v625_v0 }
  0x64   :  { %445 = vmatpush3.bf16.msra.mxu1 %v491_v9 }
  0x65   :  { %446 = vmatprep.subr.bf16.mxu1 %v625_v0  ;;  %463 = vmatpush3.bf16.msra.mxu0 %v498_v16 }
  0x66   :  { %464 = vmatprep.subr.bf16.mxu0 %v625_v0 }
  0x68   :  { %447 = vmatpush3.bf16.msra.mxu1 %v492_v10 }
  0x69   :  { %465 = vmatpush3.bf16.msra.mxu0 %v499_v31 }
  0x6a   :  { %466 = vmatprep.subr.bf16.mxu0 %v625_v0 }
  0x6d   :  { %467 = vmatpush3.bf16.msra.mxu0 %v500_v32 }
 0x122   :  { %v135_v22 = vpop.f32.mrb[0].mxu0 }
 0x123   :  { %v136_v23 = vadd.f32 %v135_v22, %v85_v21  ;;  %v430_v24 = vpop.f32.mrb[1].mxu0 }
 0x124   :  { %v138_v25 = vpop.f32.mrb[2].mxu0 }
 0x125   :  { %v139_v26 = vadd.f32 %v138_v25, %v85_v21  ;;  %v431_v27 = vpop.f32.mrb[3].mxu0  ;;  %v142_v28 = vmax.f32 %v136_v23, 0.0 }
 0x127   :  { %v143_v29 = vmax.f32 %v139_v26, 0.0 }
 0x129   :  { %v144_v30 = vpack.c.bf16 %v143_v29, %v142_v28 }
 0x12b   :  { %449 = vmatmul.mubr.bf16.vlgmr.msra.gmra.mrb[0].mxu1 %v144_v30 }
 0x1fe   :  { %v247_v35 = vpop.f32.mrb[0].mxu1 }
 0x1ff   :  { %v248_v36 = vadd.f32 %v247_v35, %v164_v34  ;;  %v450_v37 = vpop.f32.mrb[1].mxu1 }
 0x200   :  { %v250_v38 = vpop.f32.mrb[2].mxu1 }
 0x201   :  { %v251_v39 = vadd.f32 %v250_v38, %v164_v34  ;;  %v451_v40 = vpop.f32.mrb[3].mxu1  ;;  %v254_v41 = vmax.f32 %v248_v36, 0.0 }
 0x203   :  { %v255_v42 = vmax.f32 %v251_v39, 0.0 }
 0x205   :  { %v256_v43 = vpack.c.bf16 %v255_v42, %v254_v41 }
 0x207   :  { %469 = vmatmul.mubr.bf16.vlgmr.msra.gmra.mrb[4].mxu0 %v256_v43 }
 0x2da   :  { %v359_v46 = vpop.f32.mrb[4].mxu0 }
 0x2db   :  { %v360_v47 = vadd.f32 %v359_v46, %v276_v45  ;;  %v470_v48 = vpop.f32.mrb[5].mxu0 }
 0x2dc   :  { %v362_v49 = vpop.f32.mrb[6].mxu0 }
 0x2dd   :  { %366 = vst [vmem:[#allocation10] sm:$0xff] %v360_v47  ;;  %v363_v50 = vadd.f32 %v362_v49, %v276_v45  ;;  %v471_v51 = vpop.f32.mrb[7].mxu0 }
 0x2df   :  { %367 = vst [vmem:[#allocation10 + $0x8] sm:$0xff] %v363_v50 }
 0x2e0   :  { %600 = shalt.err (!%p597_p8)
}
 0x2e1   :  { %s601_s19 = scalar_lea.hbm %s774_s5, 256 }
 0x2e2   :  { %p602_p9 = scmp.ne.s32.totalorder %s774_s5, %s601_s19  ;;  %p605_p10 = scmp.lt.u32.totalorder %s601_s19, %s774_s5 }
 0x2e4   :  { %p607_p11 = pnand %p605_p10, %p602_p9 }
 0x2e6   :  { %610 = shalt.err (!%p607_p11)
}
 0x2e7   :  { %s628_s25 = smov 128   ;;  %s629_s26 = smov 8  }
 0x2e8   :  { %379 = dma.vmem_to_hbm [thread:$0]  %s374_s6, 256, %s774_s5, [#allocation4], %s628_s25, %s628_s25, %s629_s26  }
 0x2e9   :  { %617 = dma.done.wait [#allocation4], 256  }
 0x2ea   :  { %618 = vsyncadd [#allocation4], 4294967040 }
 0x2eb   :  { %383 = vsyncpa [#allocation3], 1 }
 0x2ec   :  { %384 = vsyncpa [#allocation6], 1 }
 0x2ed   :  { %385 = vsyncpa [#allocation9], 1 }
 0x2ee   :  { %386 = vsyncpa [#allocation4], 1 }

</bundles_post_ra>
